<compile_context>
chip_gen: v7x
topology: tpu7x:2x2x1
jax: 0.10.0
libtpu: 0.0.40
codegen_flags: <defaults>
</compile_context>

<pallas_src>
import jax
import jax.numpy as jnp
from jax.experimental import pallas as pl
from jax.experimental.pallas import tpu as pltpu

_LANE = 128      # lane width
_SUBLANE = 16    # row-tile granularity (satisfies bf16 (16,128) packing too)


def _round_up(n, m):
    return ((n + m - 1) // m) * m


# --------------------------------------------------------------------------
# Kernel: one row-tile of  y = x + relu(x @ Wd + bd) @ Wu + bu
# --------------------------------------------------------------------------
def _adapter_kernel(x_ref, wd_ref, bd_ref, wu_ref, bu_ref, o_ref):
    # x_ref: (T, H), wd_ref: (H, B), bd_ref: (1, B), wu_ref: (B, H),
    # bu_ref: (1, H), o_ref: (T, H).  Native-dtype MXU inputs, f32 accumulate.
    x = x_ref[...]

    # down-projection + ReLU (seq_bn default non_linearity = "relu")
    h = jnp.dot(x, wd_ref[...], preferred_element_type=jnp.float32)
    h = jnp.maximum(h + bd_ref[...].astype(jnp.float32), 0.0)

    # up-projection
    up = jnp.dot(h.astype(wu_ref.dtype), wu_ref[...],
                 preferred_element_type=jnp.float32)
    up = up + bu_ref[...].astype(jnp.float32)

    # residual connection (scaling = 1.0 for seq_bn); single cast at the store
    o_ref[...] = (up + x.astype(jnp.float32)).astype(o_ref.dtype)


# --------------------------------------------------------------------------
# Resource / tiling heuristics
# --------------------------------------------------------------------------
def _default_vmem_limit():
    """Generation-aware scoped-VMEM budget (~0.75x per-core capacity)."""
    try:
        cap = pltpu.get_tpu_info().vmem_capacity_bytes
        return max(32 << 20, min(int(cap * 0.75), 128 << 20))
    except Exception:
        return 64 << 20


def _choose_tile_rows(rows, hidden_p, bneck, x_bytes, w_bytes, vmem_limit):
    """Largest row tile (multiple of 16) whose double-buffered x/out tiles,
    single-buffered weights and f32 temporaries fit the VMEM budget, with an
    even grid-step count when >1 (v7x megacore balance)."""
    budget = int(vmem_limit * 0.8)
    # grid-invariant weights/biases, single-buffered (pl.Buffered(1))
    weight_bytes = w_bytes * (2 * hidden_p * bneck + bneck + hidden_p)
    avail = max(budget - weight_bytes, 1 << 20)
    # per-row VMEM: x + out tiles double-buffered (2 x 2 x hidden) plus the
    # f32 temporaries: h (bneck) + up/result (hidden) + x_f32 residual (hidden)
    per_row = 4 * hidden_p * x_bytes + 4 * (bneck + 2 * hidden_p)
    tile = max(_SUBLANE, (avail // per_row) // _SUBLANE * _SUBLANE)
    tile = min(tile, 2048)

    rows_r = _round_up(rows, _SUBLANE)
    if tile >= rows_r:
        return rows_r

    # round the step count to an even number (both v7x TensorCores get work);
    # only ever shrink the tile, so the VMEM fit is preserved.
    if pl.cdiv(rows, tile) % 2:
        t = tile
        while t > _SUBLANE and pl.cdiv(rows, t) % 2:
            t -= _SUBLANE
        if pl.cdiv(rows, t) % 2 == 0:
            tile = t
    return max(_SUBLANE, tile)


def _invariant_spec(shape):
    """Full-array, grid-invariant operand; single-buffered when supported."""
    try:
        return pl.BlockSpec(shape, lambda i: (0, 0),
                            pipeline_mode=pl.Buffered(1))
    except (AttributeError, TypeError):
        return pl.BlockSpec(shape, lambda i: (0, 0))


# --------------------------------------------------------------------------
# Wrapper
# --------------------------------------------------------------------------
def bottleneck_adapter(x, w_down, b_down, w_up, b_up, *,
                       tile_rows=None, vmem_limit_bytes=None):
    """x: [rows, hidden]; returns x + up(relu(down(x)))."""
    rows, hidden = x.shape
    bneck = w_down.shape[1]
    x_bytes = jnp.dtype(x.dtype).itemsize
    w_bytes = jnp.dtype(w_down.dtype).itemsize

    if vmem_limit_bytes is None:
        vmem_limit_bytes = _default_vmem_limit()

    b_down = b_down.reshape(1, -1)
    b_up = b_up.reshape(1, -1)

    # Lane-dense hidden only if needed (typical transformer hiddens are
    # already multiples of 128, so this never triggers on the hot path).
    hidden_p = _round_up(hidden, _LANE)
    if hidden_p != hidden:
        x = jnp.pad(x, ((0, 0), (0, hidden_p - hidden)))
        w_down = jnp.pad(w_down, ((0, hidden_p - hidden), (0, 0)))
        w_up = jnp.pad(w_up, ((0, 0), (0, hidden_p - hidden)))
        b_up = jnp.pad(b_up, ((0, 0), (0, hidden_p - hidden)))

    if tile_rows is None:
        tile_rows = _choose_tile_rows(rows, hidden_p, bneck,
                                      x_bytes, w_bytes, vmem_limit_bytes)
    tile_rows = max(_SUBLANE, _round_up(tile_rows, _SUBLANE))
    tile_rows = min(tile_rows, _round_up(rows, _SUBLANE))

    # No row padding: cdiv grid, Pallas masks the partial last block (rows are
    # independent, so garbage in the masked tail is never written).
    grid = (pl.cdiv(rows, tile_rows),)

    flops = 4 * rows * hidden_p * bneck  # two matmuls
    bytes_accessed = (2 * rows * hidden_p * x_bytes
                      + (2 * hidden_p * bneck + bneck + hidden_p) * w_bytes)

    out = pl.pallas_call(
        _adapter_kernel,
        out_shape=jax.ShapeDtypeStruct((rows, hidden_p), x.dtype),
        grid_spec=pltpu.PrefetchScalarGridSpec(
            num_scalar_prefetch=0,
            grid=grid,
            in_specs=[
                pl.BlockSpec((tile_rows, hidden_p), lambda i: (i, 0)),
                _invariant_spec((hidden_p, bneck)),
                _invariant_spec((1, bneck)),
                _invariant_spec((bneck, hidden_p)),
                _invariant_spec((1, hidden_p)),
            ],
            out_specs=pl.BlockSpec((tile_rows, hidden_p), lambda i: (i, 0)),
        ),
        compiler_params=pltpu.CompilerParams(
            dimension_semantics=("parallel",),
            vmem_limit_bytes=vmem_limit_bytes),
        cost_estimate=pl.CostEstimate(
            flops=flops, transcendentals=0, bytes_accessed=bytes_accessed),
    )(x, w_down, b_down, w_up, b_up)

    if hidden_p != hidden:
        out = out[:, :hidden]
    return out


def debias_adapter_forward(hidden_states, params):
    """DebiasAdapter forward over a [batch, seq, hidden] hidden-state tensor.

    Applies the inserted seq_bn adapter computation (the part DebiasAdapter
    adds and trains) as one fused Pallas kernel.
    """
    # TODO(synk): the wrapped pretrained transformer (BERT etc.) forward and
    # the `adapters` library plumbing are not reproduced; only the seq_bn
    # adapter bottleneck is implemented as a Pallas kernel.
    b, s, h = hidden_states.shape
    x2d = hidden_states.reshape(b * s, h)
    y2d = bottleneck_adapter(
        x2d, params["w_down"], params["b_down"], params["w_up"], params["b_up"]
    )
    return y2d.reshape(b, s, h)


def init_adapter_params(key, hidden, reduction_factor=16, dtype=jnp.float32):
    bottleneck = max(1, hidden // reduction_factor)
    k1, k2 = jax.random.split(key)
    scale_d = 1.0 / (hidden ** 0.5)
    scale_u = 1.0 / (bottleneck ** 0.5)
    return {
        "w_down": (jax.random.normal(k1, (hidden, bottleneck)) * scale_d).astype(dtype),
        "b_down": jnp.zeros((1, bottleneck), dtype=dtype),
        "w_up": (jax.random.normal(k2, (bottleneck, hidden)) * scale_u).astype(dtype),
        "b_up": jnp.zeros((1, hidden), dtype=dtype),
    }


if __name__ == "__main__":
    key = jax.random.PRNGKey(0)
    kx, kp = jax.random.split(key)

    batch, seq, hidden = 2, 8, 128  # rows = 16, bottleneck = 128 // 16 = 8
    x = jax.random.normal(kx, (batch, seq, hidden), dtype=jnp.float32)
    params = init_adapter_params(kp, hidden, reduction_factor=16)

    out = debias_adapter_forward(x, params)
    out = jax.block_until_ready(out)

    # reference check in plain JAX
    x2d = x.reshape(batch * seq, hidden)
    ref = (x2d
           + jnp.maximum(x2d @ params["w_down"] + params["b_down"], 0.0)
           @ params["w_up"] + params["b_up"])
    ref = ref.reshape(batch, seq, hidden)
    assert out.shape == (batch, seq, hidden)
    assert jnp.allclose(out, ref, atol=1e-4, rtol=1e-4)

    print("KERNEL_OK")
</pallas_src>

<mosaic_0001>
module attributes {stable_mosaic.version = 11 : i64} {
  func.func @_adapter_kernel(%arg0: i32, %arg1: memref<16x128xf32, #tpu.memory_space<vmem>>, %arg2: memref<128x8xf32, #tpu.memory_space<vmem>>, %arg3: memref<1x8xf32, #tpu.memory_space<vmem>>, %arg4: memref<8x128xf32, #tpu.memory_space<vmem>>, %arg5: memref<1x128xf32, #tpu.memory_space<vmem>>, %arg6: memref<16x128xf32, #tpu.memory_space<vmem>>) attributes {dimension_semantics = [#tpu.dimension_semantics<parallel>], iteration_bounds = array<i64: 1>, scalar_prefetch = 0 : i64, scratch_operands = 0 : i64, tpu.core_type = #tpu.core_type<tc>, window_params = [{transform_indices = @transform_0, window_bounds = array<i64: 16, 128>}, {pipeline_mode = #tpu.pipeline_mode<synchronous>, transform_indices = @transform_1, window_bounds = array<i64: 128, 8>}, {pipeline_mode = #tpu.pipeline_mode<synchronous>, transform_indices = @transform_2, window_bounds = array<i64: 1, 8>}, {pipeline_mode = #tpu.pipeline_mode<synchronous>, transform_indices = @transform_3, window_bounds = array<i64: 8, 128>}, {pipeline_mode = #tpu.pipeline_mode<synchronous>, transform_indices = @transform_4, window_bounds = array<i64: 1, 128>}, {transform_indices = @transform_5, window_bounds = array<i64: 16, 128>}]} {
    %c0 = arith.constant 0 : index
    %c0_0 = arith.constant 0 : index
    %0 = vector.load %arg1[%c0, %c0_0] : memref<16x128xf32, #tpu.memory_space<vmem>>, vector<16x128xf32>
    %c0_1 = arith.constant 0 : index
    %c0_2 = arith.constant 0 : index
    %1 = vector.load %arg2[%c0_1, %c0_2] : memref<128x8xf32, #tpu.memory_space<vmem>>, vector<128x8xf32>
    %cst = arith.constant dense<0.000000e+00> : vector<16x8xf32>
    %2 = tpu.matmul %0, %1, %cst {dimension_numbers = #tpu.dot_dimension_numbers<[1], [0], [0], [1], [0, 0, 1, 1], [], []>} : vector<16x128xf32>, vector<128x8xf32>, vector<16x8xf32> -> vector<16x8xf32>
    %c0_3 = arith.constant 0 : index
    %c0_4 = arith.constant 0 : index
    %3 = vector.load %arg3[%c0_3, %c0_4] : memref<1x8xf32, #tpu.memory_space<vmem>>, vector<1x8xf32>
    %4 = vector.broadcast %3 : vector<1x8xf32> to vector<16x8xf32>
    %5 = arith.addf %2, %4 : vector<16x8xf32>
    %cst_5 = arith.constant 0.000000e+00 : f32
    %6 = vector.broadcast %cst_5 : f32 to vector<16x8xf32>
    %7 = arith.maximumf %5, %6 : vector<16x8xf32>
    %c0_6 = arith.constant 0 : index
    %c0_7 = arith.constant 0 : index
    %8 = vector.load %arg4[%c0_6, %c0_7] : memref<8x128xf32, #tpu.memory_space<vmem>>, vector<8x128xf32>
    %cst_8 = arith.constant dense<0.000000e+00> : vector<16x128xf32>
    %9 = tpu.matmul %7, %8, %cst_8 {dimension_numbers = #tpu.dot_dimension_numbers<[1], [0], [0], [1], [0, 0, 1, 1], [], []>} : vector<16x8xf32>, vector<8x128xf32>, vector<16x128xf32> -> vector<16x128xf32>
    %c0_9 = arith.constant 0 : index
    %c0_10 = arith.constant 0 : index
    %10 = vector.load %arg5[%c0_9, %c0_10] : memref<1x128xf32, #tpu.memory_space<vmem>>, vector<1x128xf32>
    %11 = vector.broadcast %10 : vector<1x128xf32> to vector<16x128xf32>
    %12 = arith.addf %9, %11 : vector<16x128xf32>
    %13 = arith.addf %12, %0 : vector<16x128xf32>
    %c0_11 = arith.constant 0 : index
    %c0_12 = arith.constant 0 : index
    %14 = vector.load %arg6[%c0_11, %c0_12] : memref<16x128xf32, #tpu.memory_space<vmem>>, vector<16x128xf32>
    tpu.vector_store %arg6[%c0_11, %c0_12], %13 {strides = array<i32>} : memref<16x128xf32, #tpu.memory_space<vmem>>, vector<16x128xf32>,
    return
  }
  func.func @transform_0(%arg0: i32) -> (i32, i32) {
    %c0_i32 = arith.constant 0 : i32
    %c0_i32_0 = arith.constant 0 : i32
    return %arg0, %c0_i32 : i32, i32
  }
  func.func @transform_1(%arg0: i32) -> (i32, i32) {
    %c0_i32 = arith.constant 0 : i32
    %c0_i32_0 = arith.constant 0 : i32
    %c0_i32_1 = arith.constant 0 : i32
    return %c0_i32, %c0_i32_0 : i32, i32
  }
  func.func @transform_2(%arg0: i32) -> (i32, i32) {
    %c0_i32 = arith.constant 0 : i32
    %c0_i32_0 = arith.constant 0 : i32
    %c0_i32_1 = arith.constant 0 : i32
    return %c0_i32, %c0_i32_0 : i32, i32
  }
  func.func @transform_3(%arg0: i32) -> (i32, i32) {
    %c0_i32 = arith.constant 0 : i32
    %c0_i32_0 = arith.constant 0 : i32
    %c0_i32_1 = arith.constant 0 : i32
    return %c0_i32, %c0_i32_0 : i32, i32
  }
  func.func @transform_4(%arg0: i32) -> (i32, i32) {
    %c0_i32 = arith.constant 0 : i32
    %c0_i32_0 = arith.constant 0 : i32
    %c0_i32_1 = arith.constant 0 : i32
    return %c0_i32, %c0_i32_0 : i32, i32
  }
  func.func @transform_5(%arg0: i32) -> (i32, i32) {
    %c0_i32 = arith.constant 0 : i32
    %c0_i32_0 = arith.constant 0 : i32
    return %arg0, %c0_i32 : i32, i32
  }
}

</mosaic_0001>

<bundles_post_ra>
// kernel: tpu_custom_call.1
= control target key start
LH: loop header
LB: loop body
LE: loop exit
PB: predicated region body
PF: predicated region fallthrough
CT: control target
= control target key end

     0   :  { %10 = vsyncpa [#allocation3], 0  ;;  %s662_s0 = inlined_call_operand.hbm [shape: f32[16,128], index: 0, kind: input, shape index: {}]   ;;  %s663_s1 = inlined_call_operand.hbm [shape: f32[128,8], index: 1, kind: input, shape index: {}]   ;;  %s664_s2 = inlined_call_operand.hbm [shape: f32[1,8], index: 2, kind: input, shape index: {}]   ;;  %s665_s3 = inlined_call_operand.hbm [shape: f32[8,128], index: 3, kind: input, shape index: {}]   ;;  %s666_s4 = inlined_call_operand.hbm [shape: f32[1,128], index: 4, kind: input, shape index: {}]   ;;  %s667_s5 = inlined_call_operand.hbm [shape: f32[16,128], index: 5, kind: output, shape index: {}]  }
   0x1   :  { %11 = vsyncpa [#allocation6], 0 }
   0x2   :  { %12 = vsyncpa [#allocation9], 0 }
   0x3   :  { %13 = vsyncpa [#allocation4], 0  ;;  %s543_s18 = smov [#allocation5]   ;;  %s544_s20 = smov [#allocation8]  }
   0x4   :  { %s31_s19 = sshll.u32 %s543_s18, 4  ;;  %s54_s21 = sshll.u32 %s544_s20, 4  ;;  %s32_s19 = int_to_ptr.vmem [resolvable:$true] %s31_s19  ;;  %s55_s21 = int_to_ptr.vmem [resolvable:$true] %s54_s21 }
   0x5   :  { %s403_s24 = scalar_lea.hbm %s663_s1, 2048 }
   0x6   :  { %p404_p0 = scmp.ne.s32.totalorder %s663_s1, %s403_s24  ;;  %p407_p1 = scmp.lt.u32.totalorder %s403_s24, %s663_s1 }
   0x8   :  { %p409_p2 = pnand %p407_p1, %p404_p0 }
   0xa   :  { %412 = shalt.err (!%p409_p2)
}
   0xb   :  { %s413_s29 = scalar_lea.vmem %s32_s19, 2048  ;;  %p418_p4 = scmp.lt.s32.totalorder %s32_s19, %s32_s19 }
   0xc   :  { %p414_p3 = scmp.ne.s32.totalorder %s32_s19, %s413_s29  ;;  %p419_p5 = scmp.lt.s32.totalorder %s413_s29, %s413_s29 }
   0xe   :  { %p420_p6 = por %p419_p5, %p418_p4 }
  0x10   :  { %p421_p7 = pnand %p420_p6, %p414_p3 }
  0x12   :  { %424 = shalt.err (!%p421_p7)
}
  0x13   :  { %s545_s30 = smov 128   ;;  %s546_s6 = smov 8  }
  0x14   :  { %37 = dma.hbm_to_vmem [thread:$0]  %s663_s1, 2048, %s32_s19, [#allocation6], %s545_s30, %s545_s30, %s546_s6  }
  0x15   :  { %s425_s11 = scalar_lea.hbm %s665_s3, 128 }
  0x16   :  { %p426_p8 = scmp.ne.s32.totalorder %s665_s3, %s425_s11  ;;  %p429_p9 = scmp.lt.u32.totalorder %s425_s11, %s665_s3 }
  0x18   :  { %p431_p10 = pnand %p429_p9, %p426_p8 }
  0x1a   :  { %434 = shalt.err (!%p431_p10)
}
  0x1b   :  { %s435_s16 = scalar_lea.vmem %s55_s21, 128  ;;  %p440_p12 = scmp.lt.s32.totalorder %s55_s21, %s55_s21 }
  0x1c   :  { %p436_p11 = scmp.ne.s32.totalorder %s55_s21, %s435_s16  ;;  %p441_p13 = scmp.lt.s32.totalorder %s435_s16, %s435_s16 }
  0x1e   :  { %p442_p0 = por %p441_p13, %p440_p12 }
  0x20   :  { %p443_p1 = pnand %p442_p0, %p436_p11 }
  0x22   :  { %446 = shalt.err (!%p443_p1)
}
  0x23   :  { %57 = dma.hbm_to_vmem [thread:$0]  %s665_s3, 128, %s55_s21, [#allocation9]  }
  0x24   :  { %s547_s18 = smov [#allocation2]   ;;  %s548_s20 = smov [#allocation7]  }
  0x25   :  { %s19_s19 = sshll.u32 %s547_s18, 4  ;;  %s44_s22 = sshll.u32 %s548_s20, 4  ;;  %s20_s19 = int_to_ptr.vmem [resolvable:$true] %s19_s19  ;;  %s45_s22 = int_to_ptr.vmem [resolvable:$true] %s44_s22 }
  0x26   :  { %s447_s25 = scalar_lea.hbm %s662_s0, 256 }
  0x27   :  { %p448_p2 = scmp.ne.s32.totalorder %s662_s0, %s447_s25  ;;  %p451_p3 = scmp.lt.u32.totalorder %s447_s25, %s662_s0 }
  0x29   :  { %p453_p4 = pnand %p451_p3, %p448_p2 }
  0x2b   :  { %456 = shalt.err (!%p453_p4)
}
  0x2c   :  { %s457_s3 = scalar_lea.vmem %s20_s19, 256  ;;  %p462_p6 = scmp.lt.s32.totalorder %s20_s19, %s20_s19 }
  0x2d   :  { %p458_p5 = scmp.ne.s32.totalorder %s20_s19, %s457_s3  ;;  %p463_p7 = scmp.lt.s32.totalorder %s457_s3, %s457_s3 }
  0x2f   :  { %p464_p8 = por %p463_p7, %p462_p6 }
  0x31   :  { %p465_p9 = pnand %p464_p8, %p458_p5 }
  0x33   :  { %468 = shalt.err (!%p465_p9)
}
  0x34   :  { %25 = dma.hbm_to_vmem [thread:$0]  %s662_s0, 256, %s20_s19, [#allocation3], %s545_s30, %s545_s30, %s546_s6  }
  0x35   :  { %s469_s10 = scalar_lea.hbm %s664_s2, 16 }
  0x36   :  { %p470_p10 = scmp.ne.s32.totalorder %s664_s2, %s469_s10  ;;  %p473_p11 = scmp.lt.u32.totalorder %s469_s10, %s664_s2 }
  0x38   :  { %p475_p12 = pnand %p473_p11, %p470_p10 }
  0x3a   :  { %478 = shalt.err (!%p475_p12)
}
  0x3b   :  { %s479_s15 = scalar_lea.vmem %s45_s22, 16  ;;  %s483_s16 = scalar_lea.vmem %s45_s22, 32 }
  0x3c   :  { %p480_p13 = scmp.ne.s32.totalorder %s45_s22, %s479_s15  ;;  %p484_p0 = scmp.lt.s32.totalorder %s45_s22, %s45_s22 }
  0x3d   :  { %p485_p1 = scmp.lt.s32.totalorder %s483_s16, %s479_s15 }
  0x3f   :  { %p486_p2 = por %p485_p1, %p484_p0 }
  0x41   :  { %p487_p3 = pnand %p486_p2, %p480_p13 }
  0x43   :  { %490 = shalt.err (!%p487_p3)
}
  0x44   :  { %47 = dma.hbm_to_vmem [thread:$0]  %s664_s2, 16, %s45_s22, [#allocation6]  }
  0x45   :  { %s549_s17 = smov [#allocation10]   ;;  %s491_s23 = scalar_lea.hbm %s666_s4, 16 }
  0x46   :  { %s64_s18 = sshll.u32 %s549_s17, 4  ;;  %p492_p4 = scmp.ne.s32.totalorder %s666_s4, %s491_s23  ;;  %s65_s18 = int_to_ptr.vmem [resolvable:$true] %s64_s18 }
  0x47   :  { %p495_p5 = scmp.lt.u32.totalorder %s491_s23, %s666_s4 }
  0x49   :  { %p497_p6 = pnand %p495_p5, %p492_p4 }
  0x4b   :  { %500 = shalt.err (!%p497_p6)
}
  0x4c   :  { %s501_s28 = scalar_lea.vmem %s65_s18, 16  ;;  %s505_s2 = scalar_lea.vmem %s65_s18, 32 }
  0x4d   :  { %p502_p7 = scmp.ne.s32.totalorder %s65_s18, %s501_s28  ;;  %p506_p8 = scmp.lt.s32.totalorder %s65_s18, %s65_s18 }
  0x4e   :  { %p507_p9 = scmp.lt.s32.totalorder %s505_s2, %s501_s28 }
  0x50   :  { %p508_p10 = por %p507_p9, %p506_p8 }
  0x52   :  { %p509_p11 = pnand %p508_p10, %p502_p7 }
  0x54   :  { %512 = shalt.err (!%p509_p11)
}
  0x55   :  { %67 = dma.hbm_to_vmem [thread:$0]  %s666_s4, 16, %s65_s18, [#allocation9]  }
  0x56   :  { %535 = dma.done.wait [#allocation3], 256  }
  0x57   :  { %536 = vsyncadd [#allocation3], 4294967040 }
  0x58   :  { %537 = dma.done.wait [#allocation6], 2064  }
  0x59   :  { %538 = vsyncadd [#allocation6], 4294965232 }
  0x5a   :  { %539 = dma.done.wait [#allocation9], 144  }
  0x5b   :  { %540 = vsyncadd [#allocation9], 4294967152  ;;  %v85_v0 = vld [vmem:[#allocation5] sm:$0xff]  ;;  %v86_v1 = vld [vmem:[#allocation5 + $0x8] sm:$0xff]  ;;  %vm193_vm0 = vcmask 64512   ;;  %s550_s4 = smov [#allocation11]  }
  0x5c   :  { %v87_v2 = vld [vmem:[#allocation5 + $0x10] sm:$0xff]  ;;  %v363_v3 = vpack.c.bf16 %v86_v1, %v85_v0  ;;  %v88_v4 = vld [vmem:[#allocation5 + $0x18] sm:$0xff]  ;;  %v89_v6 = vld [vmem:[#allocation5 + $0x20] sm:$0xff]  ;;  %s284_s3 = sshll.u32 %s550_s4, 4  ;;  %s285_s3 = int_to_ptr.vmem [resolvable:$true] %s284_s3 }
  0x5d   :  { %v367_v5 = vpack.c.bf16 %v88_v4, %v87_v2  ;;  %v90_v7 = vld [vmem:[#allocation5 + $0x28] sm:$0xff]  ;;  %v83_v9 = vld [vmem:[#allocation2] sm:$0xff]  ;;  %v92_v11 = vld [vmem:[#allocation5 + $0x38] sm:$0xff]  ;;  %s513_s21 = scalar_lea.vmem %s285_s3, 256  ;;  %p518_p13 = scmp.lt.s32.totalorder %s285_s3, %s285_s3 }
  0x5e   :  { %364 = vmatprep.subr.bf16.mxu0 %v363_v3  ;;  %v371_v8 = vpack.c.bf16 %v90_v7, %v89_v6  ;;  %v91_v10 = vld [vmem:[#allocation5 + $0x30] sm:$0xff]  ;;  %355 = vmatprep.mubr.f32.mxu0 %v83_v9  ;;  %v93_v13 = vld [vmem:[#allocation5 + $0x40] sm:$0xff]  ;;  %v94_v14 = vld [vmem:[#allocation5 + $0x48] sm:$0xff]  ;;  %p514_p12 = scmp.ne.s32.totalorder %s285_s3, %s513_s21  ;;  %p519_p0 = scmp.lt.s32.totalorder %s513_s21, %s513_s21 }
  0x5f   :  { %366 = vmatpush3.bf16.msra.mxu0 %v363_v3  ;;  %v375_v12 = vpack.c.bf16 %v92_v11, %v91_v10  ;;  %v379_v15 = vpack.c.bf16 %v94_v14, %v93_v13  ;;  %v95_v16 = vld [vmem:[#allocation5 + $0x50] sm:$0xff]  ;;  %v96_v17 = vld [vmem:[#allocation5 + $0x58] sm:$0xff]  ;;  %v97_v19 = vld [vmem:[#allocation5 + $0x60] sm:$0xff] }
  0x60   :  { %368 = vmatprep.subr.bf16.mxu0 %v367_v5  ;;  %v383_v18 = vpack.c.bf16 %v96_v17, %v95_v16  ;;  %v98_v20 = vld [vmem:[#allocation5 + $0x68] sm:$0xff]  ;;  %v99_v22 = vld [vmem:[#allocation5 + $0x70] sm:$0xff]  ;;  %v100_v23 = vld [vmem:[#allocation5 + $0x78] sm:$0xff]  ;;  %p520_p1 = por %p519_p0, %p518_p13 }
  0x61   :  { %v387_v21 = vpack.c.bf16 %v98_v20, %v97_v19  ;;  %v391_v24 = vpack.c.bf16 %v100_v23, %v99_v22  ;;  %v84_v25 = vld [vmem:[#allocation2 + $0x8] sm:$0xff]  ;;  %v185_v26 = vld [vmem:[#allocation8] sm:$0xff]  ;;  %v298_v27 = vld [vmem:[#allocation7] ss:$0 sm:$0xff] }
  0x62   :  { %358 = vmatprep.subr.mxu1 %v185_v26  ;;  %v299_v34 = vld [vmem:[#allocation10] ss:$0 sm:$0xff]  ;;  %p521_p2 = pnand %p520_p1, %p514_p12 }
  0x63   :  { %370 = vmatpush3.bf16.msra.mxu0 %v367_v5  ;;  %359 = vmatpush3.msra.mxu1 %v185_v26 }
  0x64   :  { %372 = vmatprep.subr.bf16.mxu0 %v371_v8 }
  0x67   :  { %374 = vmatpush3.bf16.msra.mxu0 %v371_v8 }
  0x68   :  { %376 = vmatprep.subr.bf16.mxu0 %v375_v12 }
  0x6b   :  { %378 = vmatpush3.bf16.msra.mxu0 %v375_v12 }
  0x6c   :  { %380 = vmatprep.subr.bf16.mxu0 %v379_v15 }
  0x6f   :  { %382 = vmatpush3.bf16.msra.mxu0 %v379_v15 }
  0x70   :  { %384 = vmatprep.subr.bf16.mxu0 %v383_v18 }
  0x73   :  { %386 = vmatpush3.bf16.msra.mxu0 %v383_v18 }
  0x74   :  { %388 = vmatprep.subr.bf16.mxu0 %v387_v21 }
  0x77   :  { %390 = vmatpush3.bf16.msra.mxu0 %v387_v21 }
  0x78   :  { %392 = vmatprep.subr.bf16.mxu0 %v391_v24 }
  0x7b   :  { %394 = vmatpush3.bf16.msra.mxu0 %v391_v24 }
  0x7e   :  { %356 = vmatmul.mubr.f32.vlgmr.msra.gmra.mrb[0].mxu0 %v84_v25 }
 0x151   :  { %v357_v28 = vpop.f32.mrb[0].mxu0 }
 0x152   :  { %v180_v29 = vadd.f32 %v357_v28, %v298_v27  ;;  %v174_v30 = vpop.f32.mrb[1].mxu0 }
 0x153   :  { %v175_v31 = vadd.f32 %v298_v27, %v174_v30 }
 0x154   :  { %v184_v33 = vmax.f32 %v180_v29, 0.0 }
 0x155   :  { %v183_v32 = vmax.f32 %v175_v31, 0.0 }
 0x157   :  { %360 = vmatprep.mubr.msk.f32.mxu1 %vm193_vm0, %v183_v32 }
 0x158   :  { %361 = vmatmul.mubr.msk.f32.vlgmr.msra.gmra.mrb[0].mxu1 %vm193_vm0, %v184_v33 }
 0x22b   :  { %v362_v35 = vpop.f32.mrb[0].mxu1 }
 0x22c   :  { %v272_v36 = vadd.f32 %v362_v35, %v299_v34  ;;  %v266_v37 = vpop.f32.mrb[1].mxu1 }
 0x22d   :  { %v267_v38 = vadd.f32 %v299_v34, %v266_v37 }
 0x22e   :  { %v276_v39 = vadd.f32 %v272_v36, %v84_v25 }
 0x22f   :  { %v275_v40 = vadd.f32 %v267_v38, %v83_v9 }
 0x230   :  { %278 = vst [vmem:[#allocation11 + $0x8] sm:$0xff] %v276_v39 }
 0x231   :  { %277 = vst [vmem:[#allocation11] sm:$0xff] %v275_v40 }
 0x232   :  { %524 = shalt.err (!%p521_p2)
}
 0x233   :  { %s525_s9 = scalar_lea.hbm %s667_s5, 256 }
 0x234   :  { %p526_p3 = scmp.ne.s32.totalorder %s667_s5, %s525_s9  ;;  %p529_p4 = scmp.lt.u32.totalorder %s525_s9, %s667_s5 }
 0x236   :  { %p531_p5 = pnand %p529_p4, %p526_p3 }
 0x238   :  { %534 = shalt.err (!%p531_p5)
}
 0x239   :  { %290 = dma.vmem_to_hbm [thread:$0]  %s285_s3, 256, %s667_s5, [#allocation4], %s545_s30, %s545_s30, %s546_s6  }
 0x23a   :  { %541 = dma.done.wait [#allocation4], 256  }
 0x23b   :  { %542 = vsyncadd [#allocation4], 4294967040 }
 0x23c   :  { %294 = vsyncpa [#allocation3], 1 }
 0x23d   :  { %295 = vsyncpa [#allocation6], 1 }
 0x23e   :  { %296 = vsyncpa [#allocation9], 1 }
 0x23f   :  { %297 = vsyncpa [#allocation4], 1 }

</bundles_post_ra>
